<compile_context>
chip_gen: v6e
topology: v6e:2x2x1
jax: 0.10.0
libtpu: 0.0.40
codegen_flags: <defaults>
</compile_context>

<pallas_src>
import functools

import jax
import jax.numpy as jnp
from jax.experimental import pallas as pl
from jax.experimental.pallas import tpu as pltpu

_LANES = 128     # vreg lane width
_SUBLANES = 8    # vreg sublane depth (f32)


def _round_up(x, m):
    return ((x + m - 1) // m) * m


def _pad2d(a, rows, cols):
    r, c = a.shape
    if r == rows and c == cols:
        return a
    return jnp.pad(a, ((0, rows - r), (0, cols - c)))


# ---------------------------------------------------------------------------
# Pallas kernels (one batch tile per grid point; weights fully VMEM-resident)
# ---------------------------------------------------------------------------
def _mlp3_kernel(x_ref, w1_ref, b1_ref, w2_ref, b2_ref, w3_ref, b3_ref, o_ref):
    """fc1 -> relu -> fc2 -> relu -> a_logits; lane-dense compute, narrow store."""
    h = jnp.dot(x_ref[...], w1_ref[...], preferred_element_type=jnp.float32) + b1_ref[...]
    h = jnp.maximum(h, 0.0)
    h = jnp.dot(h, w2_ref[...], preferred_element_type=jnp.float32) + b2_ref[...]
    h = jnp.maximum(h, 0.0)
    out = jnp.dot(h, w3_ref[...], preferred_element_type=jnp.float32) + b3_ref[...]
    n_out = o_ref.shape[-1]
    o_ref[...] = out[:, :n_out].astype(o_ref.dtype)


def _mlp2_kernel(x_ref, w1_ref, b1_ref, w3_ref, b3_ref, o_ref):
    """fc1 -> relu -> a_logits (the fc2_dim is None branch)."""
    h = jnp.dot(x_ref[...], w1_ref[...], preferred_element_type=jnp.float32) + b1_ref[...]
    h = jnp.maximum(h, 0.0)
    out = jnp.dot(h, w3_ref[...], preferred_element_type=jnp.float32) + b3_ref[...]
    n_out = o_ref.shape[-1]
    o_ref[...] = out[:, :n_out].astype(o_ref.dtype)


# ---------------------------------------------------------------------------
# Wrapper
# ---------------------------------------------------------------------------
@functools.partial(jax.jit, static_argnames=("has_fc2", "block_m"))
def policy_forward(state, params, has_fc2=True, block_m=4096):
    """Run the PolicyNetwork forward pass as a batch-tiled Pallas kernel.

    state:  (B, input_dim) float32 — passed through unpadded.
    params: dict with w1 (in, fc1), b1 (1, fc1), [w2 (fc1, fc2), b2 (1, fc2)],
            w3 (*, n_actions), b3 (1, n_actions) — weights already transposed
            to (in, out) relative to the PyTorch (out, in) convention.
    """
    B, d_in = state.shape
    n_actions = params["w3"].shape[1]

    # Hidden dims padded to 128 lanes (tiny, one-time weight pad); the logits
    # are computed 128-wide in VMEM but stored at true width n_actions.
    h1_p = _round_up(params["w1"].shape[1], _LANES)
    n_out_p = _round_up(n_actions, _LANES)

    # --- batch tile: multiple of 8 rows (or the whole tiny batch), <= B -----
    bm = max(min(block_m, B), 1)
    if B >= _SUBLANES:
        bm = max(_SUBLANES, (bm // _SUBLANES) * _SUBLANES)
    else:
        bm = B                       # block dims equal the full array dims
    # v7x has 2 TensorCores: once the batch is worth splitting, make sure the
    # "parallel" batch axis has at least 2 grid steps.
    if B >= 64 and pl.cdiv(B, bm) < 2:
        bm = _round_up(pl.cdiv(B, 2), _SUBLANES)

    grid = (pl.cdiv(B, bm),)         # uneven tail handled by Pallas masking

    # Weights/biases: lane-pad only where it keeps intermediates 128-wide.
    w1_p = _pad2d(params["w1"], d_in, h1_p)
    b1_p = _pad2d(params["b1"], 1, h1_p)

    def const_spec(shape):
        # Same block for every grid point -> stays VMEM-resident, one DMA.
        return pl.BlockSpec(shape, lambda i: (0, 0))

    x_spec = pl.BlockSpec((bm, d_in), lambda i: (i, 0))        # true width
    o_spec = pl.BlockSpec((bm, n_actions), lambda i: (i, 0))   # true width

    if has_fc2:
        h2_p = _round_up(params["w2"].shape[1], _LANES)
        w2_p = _pad2d(params["w2"], h1_p, h2_p)
        b2_p = _pad2d(params["b2"], 1, h2_p)
        w3_p = _pad2d(params["w3"], h2_p, n_out_p)
        b3_p = _pad2d(params["b3"], 1, n_out_p)
        args = (state, w1_p, b1_p, w2_p, b2_p, w3_p, b3_p)
        in_specs = [
            x_spec,
            const_spec((d_in, h1_p)), const_spec((1, h1_p)),
            const_spec((h1_p, h2_p)), const_spec((1, h2_p)),
            const_spec((h2_p, n_out_p)), const_spec((1, n_out_p)),
        ]
        kernel = _mlp3_kernel
    else:
        w3_p = _pad2d(params["w3"], h1_p, n_out_p)
        b3_p = _pad2d(params["b3"], 1, n_out_p)
        args = (state, w1_p, b1_p, w3_p, b3_p)
        in_specs = [
            x_spec,
            const_spec((d_in, h1_p)), const_spec((1, h1_p)),
            const_spec((h1_p, n_out_p)), const_spec((1, n_out_p)),
        ]
        kernel = _mlp2_kernel

    return pl.pallas_call(
        kernel,
        out_shape=jax.ShapeDtypeStruct((B, n_actions), state.dtype),
        grid=grid,
        in_specs=in_specs,
        out_specs=o_spec,
        compiler_params=pltpu.CompilerParams(
            dimension_semantics=("parallel",),   # batch axis shards across TCs (v7x)
        ),
    )(*args)


# ---------------------------------------------------------------------------
# Deterministic parameter init (mirrors nn.Linear default: U(-1/sqrt(fan_in), +))
# ---------------------------------------------------------------------------
def init_params(key, input_dim, fc1_dim, fc2_dim, n_actions):
    def linear(k, fan_in, fan_out):
        kw, kb = jax.random.split(k)
        bound = 1.0 / jnp.sqrt(fan_in)
        w = jax.random.uniform(kw, (fan_in, fan_out), jnp.float32, -bound, bound)
        b = jax.random.uniform(kb, (1, fan_out), jnp.float32, -bound, bound)
        return w, b

    k1, k2, k3 = jax.random.split(key, 3)
    params = {}
    params["w1"], params["b1"] = linear(k1, input_dim, fc1_dim)
    if fc2_dim is not None:
        params["w2"], params["b2"] = linear(k2, fc1_dim, fc2_dim)
        params["w3"], params["b3"] = linear(k3, fc2_dim, n_actions)
    else:
        params["w3"], params["b3"] = linear(k3, fc1_dim, n_actions)
    return params


def reference_forward(state, params, has_fc2=True):
    h = jnp.maximum(state @ params["w1"] + params["b1"], 0.0)
    if has_fc2:
        h = jnp.maximum(h @ params["w2"] + params["b2"], 0.0)
    return h @ params["w3"] + params["b3"]


# ---------------------------------------------------------------------------
if __name__ == "__main__":
    key = jax.random.PRNGKey(0)
    k_param, k_state, k_big = jax.random.split(key, 3)

    # Small shapes consistent with PolicyNetwork(lr, input_dims=(16,),
    # n_actions=4, fc1_dim=32, fc2_dim=32)
    B, input_dim, fc1_dim, fc2_dim, n_actions = 8, 16, 32, 32, 4

    params = init_params(k_param, input_dim, fc1_dim, fc2_dim, n_actions)
    state = jax.random.normal(k_state, (B, input_dim), jnp.float32)

    logits = policy_forward(state, params, has_fc2=True)
    jax.block_until_ready(logits)
    ref = reference_forward(state, params, has_fc2=True)
    assert logits.shape == (B, n_actions)
    assert jnp.allclose(logits, ref, atol=1e-5, rtol=1e-5)

    # fc2_dim=None branch of the module.
    params_no_fc2 = init_params(k_param, input_dim, fc1_dim, None, n_actions)
    logits2 = policy_forward(state, params_no_fc2, has_fc2=False)
    jax.block_until_ready(logits2)
    ref2 = reference_forward(state, params_no_fc2, has_fc2=False)
    assert jnp.allclose(logits2, ref2, atol=1e-5, rtol=1e-5)

    # Exercise the multi-tile grid + uneven tail (B % bm != 0, masked writes).
    big_state = jax.random.normal(k_big, (100, input_dim), jnp.float32)
    logits3 = policy_forward(big_state, params, has_fc2=True, block_m=32)
    jax.block_until_ready(logits3)
    ref3 = reference_forward(big_state, params, has_fc2=True)
    assert logits3.shape == (100, n_actions)
    assert jnp.allclose(logits3, ref3, atol=1e-5, rtol=1e-5)

    # Default (large-tile) path, batch not a multiple of the tile.
    logits4 = policy_forward(big_state, params, has_fc2=True)
    jax.block_until_ready(logits4)
    assert jnp.allclose(logits4, ref3, atol=1e-5, rtol=1e-5)

    print("KERNEL_OK")
</pallas_src>

<mosaic_0001>
module attributes {stable_mosaic.version = 11 : i64} {
  func.func @_mlp3_kernel(%arg0: i32, %arg1: memref<8x16xf32, #tpu.memory_space<vmem>>, %arg2: memref<16x128xf32, #tpu.memory_space<vmem>>, %arg3: memref<1x128xf32, #tpu.memory_space<vmem>>, %arg4: memref<128x128xf32, #tpu.memory_space<vmem>>, %arg5: memref<1x128xf32, #tpu.memory_space<vmem>>, %arg6: memref<128x128xf32, #tpu.memory_space<vmem>>, %arg7: memref<1x128xf32, #tpu.memory_space<vmem>>, %arg8: memref<8x4xf32, #tpu.memory_space<vmem>>) attributes {dimension_semantics = [#tpu.dimension_semantics<parallel>], iteration_bounds = array<i64: 1>, scalar_prefetch = 0 : i64, scratch_operands = 0 : i64, tpu.core_type = #tpu.core_type<tc>, window_params = [{transform_indices = @transform_0, window_bounds = array<i64: 8, 16>}, {pipeline_mode = #tpu.pipeline_mode<synchronous>, transform_indices = @transform_1, window_bounds = array<i64: 16, 128>}, {pipeline_mode = #tpu.pipeline_mode<synchronous>, transform_indices = @transform_2, window_bounds = array<i64: 1, 128>}, {pipeline_mode = #tpu.pipeline_mode<synchronous>, transform_indices = @transform_3, window_bounds = array<i64: 128, 128>}, {pipeline_mode = #tpu.pipeline_mode<synchronous>, transform_indices = @transform_4, window_bounds = array<i64: 1, 128>}, {pipeline_mode = #tpu.pipeline_mode<synchronous>, transform_indices = @transform_5, window_bounds = array<i64: 128, 128>}, {pipeline_mode = #tpu.pipeline_mode<synchronous>, transform_indices = @transform_6, window_bounds = array<i64: 1, 128>}, {transform_indices = @transform_7, window_bounds = array<i64: 8, 4>}]} {
    %c0 = arith.constant 0 : index
    %c0_0 = arith.constant 0 : index
    %0 = vector.load %arg1[%c0, %c0_0] : memref<8x16xf32, #tpu.memory_space<vmem>>, vector<8x16xf32>
    %c0_1 = arith.constant 0 : index
    %c0_2 = arith.constant 0 : index
    %1 = vector.load %arg2[%c0_1, %c0_2] : memref<16x128xf32, #tpu.memory_space<vmem>>, vector<16x128xf32>
    %cst = arith.constant dense<0.000000e+00> : vector<8x128xf32>
    %2 = tpu.matmul %0, %1, %cst {dimension_numbers = #tpu.dot_dimension_numbers<[1], [0], [0], [1], [0, 0, 1, 1], [], []>} : vector<8x16xf32>, vector<16x128xf32>, vector<8x128xf32> -> vector<8x128xf32>
    %c0_3 = arith.constant 0 : index
    %c0_4 = arith.constant 0 : index
    %3 = vector.load %arg3[%c0_3, %c0_4] : memref<1x128xf32, #tpu.memory_space<vmem>>, vector<1x128xf32>
    %4 = vector.broadcast %3 : vector<1x128xf32> to vector<8x128xf32>
    %5 = arith.addf %2, %4 : vector<8x128xf32>
    %cst_5 = arith.constant 0.000000e+00 : f32
    %6 = vector.broadcast %cst_5 : f32 to vector<8x128xf32>
    %7 = arith.maximumf %5, %6 : vector<8x128xf32>
    %c0_6 = arith.constant 0 : index
    %c0_7 = arith.constant 0 : index
    %8 = vector.load %arg4[%c0_6, %c0_7] : memref<128x128xf32, #tpu.memory_space<vmem>>, vector<128x128xf32>
    %cst_8 = arith.constant dense<0.000000e+00> : vector<8x128xf32>
    %9 = tpu.matmul %7, %8, %cst_8 {dimension_numbers = #tpu.dot_dimension_numbers<[1], [0], [0], [1], [0, 0, 1, 1], [], []>} : vector<8x128xf32>, vector<128x128xf32>, vector<8x128xf32> -> vector<8x128xf32>
    %c0_9 = arith.constant 0 : index
    %c0_10 = arith.constant 0 : index
    %10 = vector.load %arg5[%c0_9, %c0_10] : memref<1x128xf32, #tpu.memory_space<vmem>>, vector<1x128xf32>
    %11 = vector.broadcast %10 : vector<1x128xf32> to vector<8x128xf32>
    %12 = arith.addf %9, %11 : vector<8x128xf32>
    %cst_11 = arith.constant 0.000000e+00 : f32
    %13 = vector.broadcast %cst_11 : f32 to vector<8x128xf32>
    %14 = arith.maximumf %12, %13 : vector<8x128xf32>
    %c0_12 = arith.constant 0 : index
    %c0_13 = arith.constant 0 : index
    %15 = vector.load %arg6[%c0_12, %c0_13] : memref<128x128xf32, #tpu.memory_space<vmem>>, vector<128x128xf32>
    %cst_14 = arith.constant dense<0.000000e+00> : vector<8x128xf32>
    %16 = tpu.matmul %14, %15, %cst_14 {dimension_numbers = #tpu.dot_dimension_numbers<[1], [0], [0], [1], [0, 0, 1, 1], [], []>} : vector<8x128xf32>, vector<128x128xf32>, vector<8x128xf32> -> vector<8x128xf32>
    %c0_15 = arith.constant 0 : index
    %c0_16 = arith.constant 0 : index
    %17 = vector.load %arg7[%c0_15, %c0_16] : memref<1x128xf32, #tpu.memory_space<vmem>>, vector<1x128xf32>
    %18 = vector.broadcast %17 : vector<1x128xf32> to vector<8x128xf32>
    %19 = arith.addf %16, %18 : vector<8x128xf32>
    %20 = vector.extract_strided_slice %19 {offsets = [0, 0], sizes = [8, 4], strides = [1, 1]} : vector<8x128xf32> to vector<8x4xf32>
    %c0_17 = arith.constant 0 : index
    %c0_18 = arith.constant 0 : index
    %21 = vector.load %arg8[%c0_17, %c0_18] : memref<8x4xf32, #tpu.memory_space<vmem>>, vector<8x4xf32>
    tpu.vector_store %arg8[%c0_17, %c0_18], %20 {strides = array<i32>} : memref<8x4xf32, #tpu.memory_space<vmem>>, vector<8x4xf32>,
    return
  }
  func.func @transform_0(%arg0: i32) -> (i32, i32) {
    %c0_i32 = arith.constant 0 : i32
    %c0_i32_0 = arith.constant 0 : i32
    return %arg0, %c0_i32 : i32, i32
  }
  func.func @transform_1(%arg0: i32) -> (i32, i32) {
    %c0_i32 = arith.constant 0 : i32
    %c0_i32_0 = arith.constant 0 : i32
    %c0_i32_1 = arith.constant 0 : i32
    return %c0_i32, %c0_i32_0 : i32, i32
  }
  func.func @transform_2(%arg0: i32) -> (i32, i32) {
    %c0_i32 = arith.constant 0 : i32
    %c0_i32_0 = arith.constant 0 : i32
    %c0_i32_1 = arith.constant 0 : i32
    return %c0_i32, %c0_i32_0 : i32, i32
  }
  func.func @transform_3(%arg0: i32) -> (i32, i32) {
    %c0_i32 = arith.constant 0 : i32
    %c0_i32_0 = arith.constant 0 : i32
    %c0_i32_1 = arith.constant 0 : i32
    return %c0_i32, %c0_i32_0 : i32, i32
  }
  func.func @transform_4(%arg0: i32) -> (i32, i32) {
    %c0_i32 = arith.constant 0 : i32
    %c0_i32_0 = arith.constant 0 : i32
    %c0_i32_1 = arith.constant 0 : i32
    return %c0_i32, %c0_i32_0 : i32, i32
  }
  func.func @transform_5(%arg0: i32) -> (i32, i32) {
    %c0_i32 = arith.constant 0 : i32
    %c0_i32_0 = arith.constant 0 : i32
    %c0_i32_1 = arith.constant 0 : i32
    return %c0_i32, %c0_i32_0 : i32, i32
  }
  func.func @transform_6(%arg0: i32) -> (i32, i32) {
    %c0_i32 = arith.constant 0 : i32
    %c0_i32_0 = arith.constant 0 : i32
    %c0_i32_1 = arith.constant 0 : i32
    return %c0_i32, %c0_i32_0 : i32, i32
  }
  func.func @transform_7(%arg0: i32) -> (i32, i32) {
    %c0_i32 = arith.constant 0 : i32
    %c0_i32_0 = arith.constant 0 : i32
    return %arg0, %c0_i32 : i32, i32
  }
}

</mosaic_0001>

<bundles_post_ra>
// kernel: policy_forward.1
= control target key start
LH: loop header
LB: loop body
LE: loop exit
PB: predicated region body
PF: predicated region fallthrough
CT: control target
= control target key end

     0   :  { %v424_v0 = vmov 0.0   ;;  %vm425_vm0 = vmmov 0   ;;  %vm36_vm1 = vcmask 130048   ;;  %vm298_vm2 = vcmask 31744   ;;  %s623_s1 = inlined_call_operand.vmem [shape: f32[16,128], index: 1, kind: input, shape index: {}]   ;;  %s624_s0 = inlined_call_operand.vmem [shape: f32[8,16], index: 0, kind: input, shape index: {}]   ;;  %s625_s3 = inlined_call_operand.vmem [shape: f32[128,128], index: 3, kind: input, shape index: {}]   ;;  %s626_s5 = inlined_call_operand.vmem [shape: f32[128,128], index: 5, kind: input, shape index: {}]   ;;  %s627_s2 = inlined_call_operand.vmem [shape: f32[1,128], index: 2, kind: input, shape index: {}]   ;;  %s628_s4 = inlined_call_operand.vmem [shape: f32[1,128], index: 4, kind: input, shape index: {}]   ;;  %s629_s6 = inlined_call_operand.vmem [shape: f32[1,128], index: 6, kind: input, shape index: {}]   ;;  %s630_s7 = inlined_call_operand.vmem [shape: f32[8,4], index: 7, kind: output, shape index: {}]  }
   0x1   :  { %345 = vmatprep.subr.mxu0 %v424_v0  ;;  %v28_v1 = vld [vmem:[%s623_s1 + $0x8] sm:$0xff]  ;;  %v27_v2 = vld [vmem:[%s623_s1] sm:$0xff]  ;;  %349 = vmatprep.mubr.msk.f32.mxu0 %vm425_vm0, %v424_v0  ;;  %v126_v4 = vld [vmem:[%s625_s3 + $0x78] sm:$0xff] }
   0x2   :  { %346 = vmatpush3.msra.mxu0 %v28_v1  ;;  %v26_v3 = vld [vmem:[%s624_s0] sm:$0xff]  ;;  %352 = vmatprep.subr.mxu1 %v424_v0  ;;  %v125_v5 = vld [vmem:[%s625_s3 + $0x70] sm:$0xff]  ;;  %v124_v6 = vld [vmem:[%s625_s3 + $0x68] sm:$0xff] }
   0x3   :  { %347 = vmatprep.subr.mxu0 %v424_v0  ;;  %353 = vmatpush3.msra.mxu1 %v126_v4  ;;  %v123_v7 = vld [vmem:[%s625_s3 + $0x60] sm:$0xff]  ;;  %v122_v8 = vld [vmem:[%s625_s3 + $0x58] sm:$0xff]  ;;  %v121_v9 = vld [vmem:[%s625_s3 + $0x50] sm:$0xff] }
   0x4   :  { %348 = vmatpush3.msra.mxu0 %v27_v2  ;;  %354 = vmatprep.subr.mxu1 %v424_v0  ;;  %v120_v10 = vld [vmem:[%s625_s3 + $0x48] sm:$0xff]  ;;  %v119_v11 = vld [vmem:[%s625_s3 + $0x40] sm:$0xff]  ;;  %v118_v12 = vld [vmem:[%s625_s3 + $0x38] sm:$0xff] }
   0x5   :  { %350 = vmatmul.mubr.msk.f32.vlgmr.msra.gmra.mxu0 %vm36_vm1, %v26_v3  ;;  %355 = vmatpush3.msra.mxu1 %v125_v5  ;;  %v117_v13 = vld [vmem:[%s625_s3 + $0x30] sm:$0xff]  ;;  %v116_v14 = vld [vmem:[%s625_s3 + $0x28] sm:$0xff]  ;;  %v115_v15 = vld [vmem:[%s625_s3 + $0x20] sm:$0xff] }
   0x6   :  { %356 = vmatprep.subr.mxu1 %v424_v0  ;;  %384 = vmatprep.mubr.msk.f32.mxu1 %vm425_vm0, %v424_v0  ;;  %v114_v16 = vld [vmem:[%s625_s3 + $0x18] sm:$0xff]  ;;  %v113_v17 = vld [vmem:[%s625_s3 + $0x10] sm:$0xff]  ;;  %v112_v18 = vld [vmem:[%s625_s3 + $0x8] sm:$0xff] }
   0x7   :  { %357 = vmatpush3.msra.mxu1 %v124_v6  ;;  %387 = vmatprep.subr.mxu0 %v424_v0  ;;  %v111_v19 = vld [vmem:[%s625_s3] sm:$0xff]  ;;  %v220_v20 = vld [vmem:[%s626_s5 + $0x78] sm:$0xff]  ;;  %v219_v21 = vld [vmem:[%s626_s5 + $0x70] sm:$0xff] }
   0x8   :  { %358 = vmatprep.subr.mxu1 %v424_v0  ;;  %419 = vmatprep.mubr.msk.f32.mxu0 %vm425_vm0, %v424_v0  ;;  %v218_v22 = vld [vmem:[%s626_s5 + $0x68] sm:$0xff]  ;;  %v217_v23 = vld [vmem:[%s626_s5 + $0x60] sm:$0xff]  ;;  %v216_v24 = vld [vmem:[%s626_s5 + $0x58] sm:$0xff] }
   0x9   :  { %359 = vmatpush3.msra.mxu1 %v123_v7  ;;  %388 = vmatpush3.msra.mxu0 %v220_v20  ;;  %v215_v25 = vld [vmem:[%s626_s5 + $0x50] sm:$0xff]  ;;  %v214_v26 = vld [vmem:[%s626_s5 + $0x48] sm:$0xff]  ;;  %v213_v27 = vld [vmem:[%s626_s5 + $0x40] sm:$0xff] }
   0xa   :  { %360 = vmatprep.subr.mxu1 %v424_v0  ;;  %389 = vmatprep.subr.mxu0 %v424_v0  ;;  %v212_v28 = vld [vmem:[%s626_s5 + $0x38] sm:$0xff]  ;;  %v211_v29 = vld [vmem:[%s626_s5 + $0x30] sm:$0xff]  ;;  %v210_v30 = vld [vmem:[%s626_s5 + $0x28] sm:$0xff] }
   0xb   :  { %361 = vmatpush3.msra.mxu1 %v122_v8  ;;  %390 = vmatpush3.msra.mxu0 %v219_v21  ;;  %v209_v31 = vld [vmem:[%s626_s5 + $0x20] sm:$0xff]  ;;  %v208_v32 = vld [vmem:[%s626_s5 + $0x18] sm:$0xff]  ;;  %v207_v38 = vld [vmem:[%s626_s5 + $0x10] sm:$0xff] }
   0xc   :  { %362 = vmatprep.subr.mxu1 %v424_v0  ;;  %391 = vmatprep.subr.mxu0 %v424_v0  ;;  %v304_v33 = vld [vmem:[%s627_s2] ss:$0 sm:$0xff]  ;;  %v206_v39 = vld [vmem:[%s626_s5 + $0x8] sm:$0xff] }
   0xd   :  { %363 = vmatpush3.msra.mxu1 %v121_v9  ;;  %392 = vmatpush3.msra.mxu0 %v218_v22  ;;  %v205_v40 = vld [vmem:[%s626_s5] sm:$0xff] }
   0xe   :  { %364 = vmatprep.subr.mxu1 %v424_v0  ;;  %393 = vmatprep.subr.mxu0 %v424_v0  ;;  %v306_v41 = vld [vmem:[%s628_s4] ss:$0 sm:$0xff] }
   0xf   :  { %365 = vmatpush3.msra.mxu1 %v120_v10  ;;  %394 = vmatpush3.msra.mxu0 %v217_v23  ;;  %v307_v46 = vld [vmem:[%s629_s6] ss:$0 sm:$0xff] }
  0x10   :  { %366 = vmatprep.subr.mxu1 %v424_v0  ;;  %395 = vmatprep.subr.mxu0 %v424_v0 }
  0x11   :  { %367 = vmatpush3.msra.mxu1 %v119_v11  ;;  %396 = vmatpush3.msra.mxu0 %v216_v24 }
  0x12   :  { %368 = vmatprep.subr.mxu1 %v424_v0  ;;  %397 = vmatprep.subr.mxu0 %v424_v0 }
  0x13   :  { %369 = vmatpush3.msra.mxu1 %v118_v12  ;;  %398 = vmatpush3.msra.mxu0 %v215_v25 }
  0x14   :  { %370 = vmatprep.subr.mxu1 %v424_v0  ;;  %399 = vmatprep.subr.mxu0 %v424_v0 }
  0x15   :  { %371 = vmatpush3.msra.mxu1 %v117_v13  ;;  %400 = vmatpush3.msra.mxu0 %v214_v26 }
  0x16   :  { %372 = vmatprep.subr.mxu1 %v424_v0  ;;  %401 = vmatprep.subr.mxu0 %v424_v0 }
  0x17   :  { %373 = vmatpush3.msra.mxu1 %v116_v14  ;;  %402 = vmatpush3.msra.mxu0 %v213_v27 }
  0x18   :  { %374 = vmatprep.subr.mxu1 %v424_v0  ;;  %403 = vmatprep.subr.mxu0 %v424_v0 }
  0x19   :  { %375 = vmatpush3.msra.mxu1 %v115_v15  ;;  %404 = vmatpush3.msra.mxu0 %v212_v28 }
  0x1a   :  { %376 = vmatprep.subr.mxu1 %v424_v0  ;;  %405 = vmatprep.subr.mxu0 %v424_v0 }
  0x1b   :  { %377 = vmatpush3.msra.mxu1 %v114_v16  ;;  %406 = vmatpush3.msra.mxu0 %v211_v29 }
  0x1c   :  { %378 = vmatprep.subr.mxu1 %v424_v0  ;;  %407 = vmatprep.subr.mxu0 %v424_v0 }
  0x1d   :  { %379 = vmatpush3.msra.mxu1 %v113_v17  ;;  %408 = vmatpush3.msra.mxu0 %v210_v30 }
  0x1e   :  { %380 = vmatprep.subr.mxu1 %v424_v0  ;;  %409 = vmatprep.subr.mxu0 %v424_v0 }
  0x1f   :  { %381 = vmatpush3.msra.mxu1 %v112_v18  ;;  %410 = vmatpush3.msra.mxu0 %v209_v31 }
  0x20   :  { %382 = vmatprep.subr.mxu1 %v424_v0  ;;  %411 = vmatprep.subr.mxu0 %v424_v0 }
  0x21   :  { %383 = vmatpush3.msra.mxu1 %v111_v19  ;;  %412 = vmatpush3.msra.mxu0 %v208_v32 }
  0x22   :  { %413 = vmatprep.subr.mxu0 %v424_v0 }
  0x23   :  { %414 = vmatpush3.msra.mxu0 %v207_v38 }
  0x24   :  { %415 = vmatprep.subr.mxu0 %v424_v0 }
  0x25   :  { %416 = vmatpush3.msra.mxu0 %v206_v39 }
  0x26   :  { %417 = vmatprep.subr.mxu0 %v424_v0 }
  0x27   :  { %418 = vmatpush3.msra.mxu0 %v205_v40 }
  0xc5   :  { %v106_v34 = vpop.f32.mrf.mxu0 }
  0xc6   :  { %v107_v35 = vadd.f32 %v304_v33, %v106_v34 }
  0xc7   :  { %v351_v36 = vpop.f32.mrf.mxu0 }
  0xc8   :  { %v110_v37 = vmax.f32 %v107_v35, 0.0 }
  0xca   :  { %385 = vmatmul.mubr.f32.vlgmr.msra.gmra.mxu1 %v110_v37 }
 0x18a   :  { %v200_v42 = vpop.f32.mrf.mxu1 }
 0x18b   :  { %v201_v43 = vadd.f32 %v306_v41, %v200_v42 }
 0x18c   :  { %v386_v44 = vpop.f32.mrf.mxu1 }
 0x18d   :  { %v204_v45 = vmax.f32 %v201_v43, 0.0 }
 0x18f   :  { %420 = vmatmul.mubr.f32.vlgmr.msra.gmra.mxu0 %v204_v45 }
 0x24f   :  { %v294_v47 = vpop.f32.mrf.mxu0 }
 0x250   :  { %v295_v48 = vadd.f32 %v307_v46, %v294_v47 }
 0x251   :  { %v421_v49 = vpop.f32.mrf.mxu0 }
 0x252   :  { %299 = vst.msk [vmem:[%s630_s7] sm:$0xff] %vm298_vm2, %v295_v48 }

</bundles_post_ra>
